<compile_context>
chip_gen: v7x
topology: tpu7x:2x2x1
jax: 0.10.0
libtpu: 0.0.40
codegen_flags: <defaults>
</compile_context>

<pallas_src>
import functools

import jax
import jax.numpy as jnp
from jax.experimental import pallas as pl
from jax.experimental.pallas import tpu as pltpu


def _vmem_capacity_bytes():
    """Physical VMEM of the attached TPU (v5e/v6e: 128 MiB, v7x: 64 MiB)."""
    try:
        info = pltpu.get_tpu_info()
        cap = int(getattr(info, "vmem_capacity_bytes", 0))
        if cap > 0:
            return cap
    except Exception:
        pass
    return 64 * 1024 * 1024  # conservative (v7x-sized) default


def _conv_block_kernel(xw_ref, wT_ref, b_ref, o_ref, *, rows, compute_dtype,
                       negative_slope):
    # xw_ref: (rows+2, Kg)  halo'd input rows; lanes = (CG+2) columns x Cin
    # wT_ref: (3, Kg, Ng)   column-banded tap weights (grid-invariant, resident)
    # b_ref : (1, Ng)       bias tiled over the CG folded output columns (f32)
    # o_ref : (rows, Ng)    lane-dense output tile (Ng = CG*Cout >= lane_target)
    x = xw_ref[...].astype(jnp.float32)          # one aligned load; f32 slicing is safe
    acc = b_ref[...].astype(jnp.float32)         # broadcasts over rows
    for dy in range(3):                          # static unroll: 3 MXU matmuls
        lhs = x[dy:dy + rows, :].astype(compute_dtype)
        acc = acc + jnp.dot(lhs, wT_ref[dy], preferred_element_type=jnp.float32)
    out = jnp.where(acc >= 0, acc, negative_slope * acc)   # LeakyReLU(0.2) in f32
    o_ref[...] = out.astype(o_ref.dtype)


def conv_block_forward(x, weight, bias, *, negative_slope=0.2,
                       data_format="NCHW", compute_dtype=jnp.bfloat16,
                       lane_target=128, block_rows=None):
    """ConvBlock forward: Conv2d(Cin, Cout, 3, stride=1, padding=1) + LeakyReLU(0.2).

    x:       (N, Cin, H, W) if data_format == "NCHW" (PyTorch layout, default) or
             (N, H, W, Cin) if data_format == "NHWC" (preferred when chaining
             blocks: avoids two full HBM transpose passes per layer).
    weight:  (Cout, Cin, 3, 3)   (PyTorch layout)
    bias:    (Cout,)
    compute_dtype: MXU operand dtype (default bf16; accumulation is always f32).
                   Use jnp.float32 for bit-faithful module numerics.
    lane_target:   output lanes per grid step (128; 256 can help v6e/v7x's
                   256-wide MXUs for small Cout at the cost of more banded FLOPs).
    """
    if data_format == "NCHW":
        x_nhwc = jnp.transpose(x, (0, 2, 3, 1))
    elif data_format == "NHWC":
        x_nhwc = x
    else:
        raise ValueError(f"unsupported data_format: {data_format}")
    N, H, W, Cin = x_nhwc.shape
    Cout = weight.shape[0]
    out_dtype = x_nhwc.dtype

    # Column folding so the output tile is lane-dense (>= lane_target lanes).
    CG = 1 if Cout >= lane_target else pl.cdiv(lane_target, Cout)
    CG = max(1, min(CG, max(W, 1)))
    GW = pl.cdiv(W, CG)
    Wp = GW * CG
    Ng = CG * Cout                       # output lanes per step
    Kg = (CG + 2) * Cin                  # input lanes per step (column halo incl.)

    # Generation-aware row-block sizing + explicit VMEM limit.
    vmem_cap = _vmem_capacity_bytes()
    budget = max(4 * 1024 * 1024, vmem_cap // 8)       # per double-buffered in+out pair
    in_item = jnp.dtype(compute_dtype).itemsize
    out_item = jnp.dtype(out_dtype).itemsize
    row_bytes = Kg * in_item + Ng * out_item
    row_align = 16 if in_item < 4 else 8                # bf16 packs 2 rows / sublane
    rows = block_rows if block_rows is not None else max(row_align,
                                                         budget // max(row_bytes, 1))
    rows = max(1, min(int(rows), H))
    if rows < H:
        rows = max(row_align, (rows // row_align) * row_align)
        rows = min(rows, H)
    HB = pl.cdiv(H, rows)
    # v7x shares the 'parallel' grid across 2 TensorCores: keep >=2 steps when the
    # image is tall enough (costs ~0.35us/extra step on single-TC v5e/v6e).
    if N * HB * GW < 2 and H >= 4 * row_align:
        rows = max(row_align, ((H // 2) // row_align) * row_align)
        HB = pl.cdiv(H, rows)
    Hp = HB * rows
    NB = N * HB

    # Glue (fuses into ~one HBM pass, ~1.1-1.3x input bytes): zero-pad the border,
    # cut overlapping row blocks (2-row halo) and column groups (2-col halo).
    xp = jnp.pad(x_nhwc, ((0, 0), (1, 1 + Hp - H), (1, 1 + Wp - W), (0, 0)))
    rw = jnp.stack([xp[:, b * rows:b * rows + rows + 2] for b in range(HB)], axis=1)
    cw = jnp.stack([rw[:, :, :, g * CG:g * CG + CG + 2, :] for g in range(GW)], axis=2)
    windows = cw.reshape(NB, GW, rows + 2, Kg).astype(compute_dtype)

    # Column-banded (block-Toeplitz) tap weights:
    #   T[dy, (s,ci), (j,o)] = w[o,ci,dy,dx] iff s == j + dx, else 0.
    # Exactly the 3x3 taps when CG == 1; size never depends on the image size.
    w_tap = jnp.transpose(weight, (2, 3, 1, 0))              # (dy, dx, Cin, Cout)
    eyes = jnp.stack([jnp.eye(CG + 2, CG, k=-dx, dtype=weight.dtype)
                      for dx in range(3)], axis=0)           # (dx, CG+2, CG)
    wT = jnp.einsum("dij,ydco->yicjo", eyes, w_tap).reshape(3, Kg, Ng)
    wT = wT.astype(compute_dtype)
    b2 = jnp.tile(bias.astype(jnp.float32), CG).reshape(1, Ng)

    kernel = functools.partial(_conv_block_kernel, rows=rows,
                               compute_dtype=compute_dtype,
                               negative_slope=negative_slope)

    flops = 2 * 3 * NB * GW * rows * Kg * Ng
    bytes_accessed = (windows.size * in_item + wT.size * in_item + b2.size * 4
                      + NB * GW * rows * Ng * out_item)
    cost = pl.CostEstimate(flops=int(flops), transcendentals=0,
                           bytes_accessed=int(bytes_accessed))
    vmem_limit = int(min(vmem_cap * 3 // 4, 96 * 1024 * 1024))  # 48 MiB on v7x

    def build(single_buffer_consts):
        const_kw = dict(pipeline_mode=pl.Buffered(1)) if single_buffer_consts else {}
        return pl.pallas_call(
            kernel,
            out_shape=jax.ShapeDtypeStruct((NB, GW, rows, Ng), out_dtype),
            grid_spec=pltpu.PrefetchScalarGridSpec(
                num_scalar_prefetch=0,
                grid=(NB, GW),
                in_specs=[
                    pl.BlockSpec((None, None, rows + 2, Kg),
                                 lambda i, g: (i, g, 0, 0)),
                    pl.BlockSpec((3, Kg, Ng), lambda i, g: (0, 0, 0), **const_kw),
                    pl.BlockSpec((1, Ng), lambda i, g: (0, 0), **const_kw),
                ],
                out_specs=pl.BlockSpec((None, None, rows, Ng),
                                       lambda i, g: (i, g, 0, 0)),
            ),
            compiler_params=pltpu.CompilerParams(
                dimension_semantics=("parallel", "parallel"),
                vmem_limit_bytes=vmem_limit),
            cost_estimate=cost,
        )

    try:
        out5 = build(True)(windows, wT, b2)
    except Exception:
        # Fallback for Pallas builds without BlockSpec(pipeline_mode=...).
        out5 = build(False)(windows, wT, b2)

    out = out5.reshape(N, HB, GW, rows, CG, Cout)
    out = jnp.transpose(out, (0, 1, 3, 2, 4, 5)).reshape(N, Hp, Wp, Cout)
    out = out[:, :H, :W, :]
    if data_format == "NCHW":
        out = jnp.transpose(out, (0, 3, 1, 2))
    return out


def _reference_forward(x_nchw, weight, bias, negative_slope=0.2):
    """Pure-JAX reference (lax conv) for the correctness check."""
    out = jax.lax.conv_general_dilated(
        x_nchw, weight,
        window_strides=(1, 1),
        padding=((1, 1), (1, 1)),
        dimension_numbers=("NCHW", "OIHW", "NCHW"))
    out = out + bias.reshape(1, -1, 1, 1)
    return jnp.where(out >= 0, out, negative_slope * out)


if __name__ == "__main__":
    # ConvBlock(ndims=2, in_channels=4, out_channels=8, stride=1)
    N, Cin, Cout, H, W = 2, 4, 8, 16, 16

    key = jax.random.PRNGKey(0)
    kx, kw, kb = jax.random.split(key, 3)
    x = jax.random.normal(kx, (N, Cin, H, W), dtype=jnp.float32)
    weight = 0.1 * jax.random.normal(kw, (Cout, Cin, 3, 3), dtype=jnp.float32)
    bias = 0.1 * jax.random.normal(kb, (Cout,), dtype=jnp.float32)

    ref = _reference_forward(x, weight, bias)

    # Exact-f32 path: must reproduce the PyTorch module numerics tightly.
    out_f32 = jax.block_until_ready(
        conv_block_forward(x, weight, bias, compute_dtype=jnp.float32))
    assert out_f32.shape == (N, Cout, H, W)
    assert jnp.allclose(out_f32, ref, atol=1e-4, rtol=1e-4), "f32 path mismatch"

    # Default bf16-MXU path (f32 accumulation): looser tolerance by construction.
    out_bf16 = jax.block_until_ready(conv_block_forward(x, weight, bias))
    assert out_bf16.shape == (N, Cout, H, W)
    assert jnp.allclose(out_bf16, ref, atol=5e-2, rtol=5e-2), "bf16 path mismatch"

    # NHWC end-to-end path (no NCHW<->NHWC HBM passes).
    x_nhwc = jnp.transpose(x, (0, 2, 3, 1))
    out_nhwc = jax.block_until_ready(
        conv_block_forward(x_nhwc, weight, bias, data_format="NHWC",
                           compute_dtype=jnp.float32))
    assert jnp.allclose(jnp.transpose(out_nhwc, (0, 3, 1, 2)), ref,
                        atol=1e-4, rtol=1e-4), "NHWC path mismatch"

    print("KERNEL_OK")
</pallas_src>

<mosaic_0001>
module attributes {stable_mosaic.version = 11 : i64} {
  func.func @_conv_block_kernel(%arg0: i32, %arg1: i32, %arg2: memref<1x1x18x72xf32, #tpu.memory_space<vmem>>, %arg3: memref<3x72x128xf32, #tpu.memory_space<vmem>>, %arg4: memref<1x128xf32, #tpu.memory_space<vmem>>, %arg5: memref<1x1x16x128xf32, #tpu.memory_space<vmem>>) attributes {dimension_semantics = [#tpu.dimension_semantics<parallel>, #tpu.dimension_semantics<parallel>], iteration_bounds = array<i64: 2, 1>, scalar_prefetch = 0 : i64, scratch_operands = 0 : i64, tpu.core_type = #tpu.core_type<tc>, window_params = [{transform_indices = @transform_0, window_bounds = array<i64: 1, 1, 18, 72>}, {pipeline_mode = #tpu.pipeline_mode<synchronous>, transform_indices = @transform_1, window_bounds = array<i64: 3, 72, 128>}, {pipeline_mode = #tpu.pipeline_mode<synchronous>, transform_indices = @transform_2, window_bounds = array<i64: 1, 128>}, {transform_indices = @transform_3, window_bounds = array<i64: 1, 1, 16, 128>}]} {
    %c0 = arith.constant 0 : index
    %c0_0 = arith.constant 0 : index
    %c0_1 = arith.constant 0 : index
    %c0_2 = arith.constant 0 : index
    %0 = vector.load %arg2[%c0, %c0_0, %c0_1, %c0_2] : memref<1x1x18x72xf32, #tpu.memory_space<vmem>>, vector<1x1x18x72xf32>
    %1 = vector.shape_cast %0 : vector<1x1x18x72xf32> to vector<18x72xf32>
    %c0_3 = arith.constant 0 : index
    %c0_4 = arith.constant 0 : index
    %2 = vector.load %arg4[%c0_3, %c0_4] : memref<1x128xf32, #tpu.memory_space<vmem>>, vector<1x128xf32>
    %3 = vector.extract_strided_slice %1 {offsets = [0, 0], sizes = [16, 72], strides = [1, 1]} : vector<18x72xf32> to vector<16x72xf32>
    %c0_5 = arith.constant 0 : index
    %c0_6 = arith.constant 0 : index
    %c0_7 = arith.constant 0 : index
    %4 = vector.load %arg3[%c0_5, %c0_6, %c0_7] : memref<3x72x128xf32, #tpu.memory_space<vmem>>, vector<1x72x128xf32>
    %5 = vector.shape_cast %4 : vector<1x72x128xf32> to vector<72x128xf32>
    %cst = arith.constant dense<0.000000e+00> : vector<16x128xf32>
    %6 = tpu.matmul %3, %5, %cst {dimension_numbers = #tpu.dot_dimension_numbers<[1], [0], [0], [1], [0, 0, 1, 1], [], []>} : vector<16x72xf32>, vector<72x128xf32>, vector<16x128xf32> -> vector<16x128xf32>
    %7 = vector.broadcast %2 : vector<1x128xf32> to vector<16x128xf32>
    %8 = arith.addf %7, %6 : vector<16x128xf32>
    %9 = vector.extract_strided_slice %1 {offsets = [1, 0], sizes = [16, 72], strides = [1, 1]} : vector<18x72xf32> to vector<16x72xf32>
    %c1 = arith.constant 1 : index
    %c0_8 = arith.constant 0 : index
    %c0_9 = arith.constant 0 : index
    %10 = vector.load %arg3[%c1, %c0_8, %c0_9] : memref<3x72x128xf32, #tpu.memory_space<vmem>>, vector<1x72x128xf32>
    %11 = vector.shape_cast %10 : vector<1x72x128xf32> to vector<72x128xf32>
    %cst_10 = arith.constant dense<0.000000e+00> : vector<16x128xf32>
    %12 = tpu.matmul %9, %11, %cst_10 {dimension_numbers = #tpu.dot_dimension_numbers<[1], [0], [0], [1], [0, 0, 1, 1], [], []>} : vector<16x72xf32>, vector<72x128xf32>, vector<16x128xf32> -> vector<16x128xf32>
    %13 = arith.addf %8, %12 : vector<16x128xf32>
    %14 = vector.extract_strided_slice %1 {offsets = [2, 0], sizes = [16, 72], strides = [1, 1]} : vector<18x72xf32> to vector<16x72xf32>
    %c2 = arith.constant 2 : index
    %c0_11 = arith.constant 0 : index
    %c0_12 = arith.constant 0 : index
    %15 = vector.load %arg3[%c2, %c0_11, %c0_12] : memref<3x72x128xf32, #tpu.memory_space<vmem>>, vector<1x72x128xf32>
    %16 = vector.shape_cast %15 : vector<1x72x128xf32> to vector<72x128xf32>
    %cst_13 = arith.constant dense<0.000000e+00> : vector<16x128xf32>
    %17 = tpu.matmul %14, %16, %cst_13 {dimension_numbers = #tpu.dot_dimension_numbers<[1], [0], [0], [1], [0, 0, 1, 1], [], []>} : vector<16x72xf32>, vector<72x128xf32>, vector<16x128xf32> -> vector<16x128xf32>
    %18 = arith.addf %13, %17 : vector<16x128xf32>
    %cst_14 = arith.constant 0.000000e+00 : f32
    %19 = vector.broadcast %cst_14 : f32 to vector<16x128xf32>
    %20 = arith.cmpf oge, %18, %19 : vector<16x128xf32>
    %cst_15 = arith.constant 2.000000e-01 : f32
    %21 = vector.broadcast %cst_15 : f32 to vector<16x128xf32>
    %22 = arith.mulf %21, %18 : vector<16x128xf32>
    %23 = arith.select %20, %18, %22 : vector<16x128xi1>, vector<16x128xf32>
    %c0_16 = arith.constant 0 : index
    %c0_17 = arith.constant 0 : index
    %c0_18 = arith.constant 0 : index
    %c0_19 = arith.constant 0 : index
    %24 = vector.load %arg5[%c0_16, %c0_17, %c0_18, %c0_19] : memref<1x1x16x128xf32, #tpu.memory_space<vmem>>, vector<1x1x16x128xf32>
    %25 = vector.shape_cast %24 : vector<1x1x16x128xf32> to vector<16x128xf32>
    %26 = vector.shape_cast %23 : vector<16x128xf32> to vector<1x1x16x128xf32>
    tpu.vector_store %arg5[%c0_16, %c0_17, %c0_18, %c0_19], %26 {strides = array<i32>} : memref<1x1x16x128xf32, #tpu.memory_space<vmem>>, vector<1x1x16x128xf32>,
    return
  }
  func.func @transform_0(%arg0: i32, %arg1: i32) -> (i32, i32, i32, i32) {
    %c0_i32 = arith.constant 0 : i32
    %c0_i32_0 = arith.constant 0 : i32
    %c0_i32_1 = arith.constant 0 : i32
    return %arg0, %arg1, %c0_i32, %c0_i32_0 : i32, i32, i32, i32
  }
  func.func @transform_1(%arg0: i32, %arg1: i32) -> (i32, i32, i32) {
    %c0_i32 = arith.constant 0 : i32
    %c0_i32_0 = arith.constant 0 : i32
    %c0_i32_1 = arith.constant 0 : i32
    %c0_i32_2 = arith.constant 0 : i32
    return %c0_i32, %c0_i32_0, %c0_i32_1 : i32, i32, i32
  }
  func.func @transform_2(%arg0: i32, %arg1: i32) -> (i32, i32) {
    %c0_i32 = arith.constant 0 : i32
    %c0_i32_0 = arith.constant 0 : i32
    %c0_i32_1 = arith.constant 0 : i32
    return %c0_i32, %c0_i32_0 : i32, i32
  }
  func.func @transform_3(%arg0: i32, %arg1: i32) -> (i32, i32, i32, i32) {
    %c0_i32 = arith.constant 0 : i32
    %c0_i32_0 = arith.constant 0 : i32
    %c0_i32_1 = arith.constant 0 : i32
    return %arg0, %arg1, %c0_i32, %c0_i32_0 : i32, i32, i32, i32
  }
}

module attributes {stable_mosaic.version = 11 : i64} {
  func.func @_conv_block_kernel(%arg0: i32, %arg1: i32, %arg2: memref<1x1x18x72xf32, #tpu.memory_space<vmem>>, %arg3: memref<3x72x128xf32, #tpu.memory_space<vmem>>, %arg4: memref<1x128xf32, #tpu.memory_space<vmem>>, %arg5: memref<1x1x16x128xf32, #tpu.memory_space<vmem>>) attributes {dimension_semantics = [#tpu.dimension_semantics<parallel>, #tpu.dimension_semantics<parallel>], iteration_bounds = array<i64: 2, 1>, scalar_prefetch = 0 : i64, scratch_operands = 0 : i64, tpu.core_type = #tpu.core_type<tc>, window_params = [{transform_indices = @transform_0, window_bounds = array<i64: 1, 1, 18, 72>}, {pipeline_mode = #tpu.pipeline_mode<synchronous>, transform_indices = @transform_1, window_bounds = array<i64: 3, 72, 128>}, {pipeline_mode = #tpu.pipeline_mode<synchronous>, transform_indices = @transform_2, window_bounds = array<i64: 1, 128>}, {transform_indices = @transform_3, window_bounds = array<i64: 1, 1, 16, 128>}]} {
    %c0 = arith.constant 0 : index
    %c0_0 = arith.constant 0 : index
    %c0_1 = arith.constant 0 : index
    %c0_2 = arith.constant 0 : index
    %0 = vector.load %arg2[%c0, %c0_0, %c0_1, %c0_2] : memref<1x1x18x72xf32, #tpu.memory_space<vmem>>, vector<1x1x18x72xf32>
    %1 = vector.shape_cast %0 : vector<1x1x18x72xf32> to vector<18x72xf32>
    %c0_3 = arith.constant 0 : index
    %c0_4 = arith.constant 0 : index
    %2 = vector.load %arg4[%c0_3, %c0_4] : memref<1x128xf32, #tpu.memory_space<vmem>>, vector<1x128xf32>
    %3 = vector.extract_strided_slice %1 {offsets = [0, 0], sizes = [16, 72], strides = [1, 1]} : vector<18x72xf32> to vector<16x72xf32>
    %c0_5 = arith.constant 0 : index
    %c0_6 = arith.constant 0 : index
    %c0_7 = arith.constant 0 : index
    %4 = vector.load %arg3[%c0_5, %c0_6, %c0_7] : memref<3x72x128xf32, #tpu.memory_space<vmem>>, vector<1x72x128xf32>
    %5 = vector.shape_cast %4 : vector<1x72x128xf32> to vector<72x128xf32>
    %cst = arith.constant dense<0.000000e+00> : vector<16x128xf32>
    %6 = tpu.matmul %3, %5, %cst {dimension_numbers = #tpu.dot_dimension_numbers<[1], [0], [0], [1], [0, 0, 1, 1], [], []>} : vector<16x72xf32>, vector<72x128xf32>, vector<16x128xf32> -> vector<16x128xf32>
    %7 = vector.broadcast %2 : vector<1x128xf32> to vector<16x128xf32>
    %8 = arith.addf %7, %6 : vector<16x128xf32>
    %9 = vector.extract_strided_slice %1 {offsets = [1, 0], sizes = [16, 72], strides = [1, 1]} : vector<18x72xf32> to vector<16x72xf32>
    %c1 = arith.constant 1 : index
    %c0_8 = arith.constant 0 : index
    %c0_9 = arith.constant 0 : index
    %10 = vector.load %arg3[%c1, %c0_8, %c0_9] : memref<3x72x128xf32, #tpu.memory_space<vmem>>, vector<1x72x128xf32>
    %11 = vector.shape_cast %10 : vector<1x72x128xf32> to vector<72x128xf32>
    %cst_10 = arith.constant dense<0.000000e+00> : vector<16x128xf32>
    %12 = tpu.matmul %9, %11, %cst_10 {dimension_numbers = #tpu.dot_dimension_numbers<[1], [0], [0], [1], [0, 0, 1, 1], [], []>} : vector<16x72xf32>, vector<72x128xf32>, vector<16x128xf32> -> vector<16x128xf32>
    %13 = arith.addf %8, %12 : vector<16x128xf32>
    %14 = vector.extract_strided_slice %1 {offsets = [2, 0], sizes = [16, 72], strides = [1, 1]} : vector<18x72xf32> to vector<16x72xf32>
    %c2 = arith.constant 2 : index
    %c0_11 = arith.constant 0 : index
    %c0_12 = arith.constant 0 : index
    %15 = vector.load %arg3[%c2, %c0_11, %c0_12] : memref<3x72x128xf32, #tpu.memory_space<vmem>>, vector<1x72x128xf32>
    %16 = vector.shape_cast %15 : vector<1x72x128xf32> to vector<72x128xf32>
    %cst_13 = arith.constant dense<0.000000e+00> : vector<16x128xf32>
    %17 = tpu.matmul %14, %16, %cst_13 {dimension_numbers = #tpu.dot_dimension_numbers<[1], [0], [0], [1], [0, 0, 1, 1], [], []>} : vector<16x72xf32>, vector<72x128xf32>, vector<16x128xf32> -> vector<16x128xf32>
    %18 = arith.addf %13, %17 : vector<16x128xf32>
    %cst_14 = arith.constant 0.000000e+00 : f32
    %19 = vector.broadcast %cst_14 : f32 to vector<16x128xf32>
    %20 = arith.cmpf oge, %18, %19 : vector<16x128xf32>
    %cst_15 = arith.constant 2.000000e-01 : f32
    %21 = vector.broadcast %cst_15 : f32 to vector<16x128xf32>
    %22 = arith.mulf %21, %18 : vector<16x128xf32>
    %23 = arith.select %20, %18, %22 : vector<16x128xi1>, vector<16x128xf32>
    %c0_16 = arith.constant 0 : index
    %c0_17 = arith.constant 0 : index
    %c0_18 = arith.constant 0 : index
    %c0_19 = arith.constant 0 : index
    %24 = vector.load %arg5[%c0_16, %c0_17, %c0_18, %c0_19] : memref<1x1x16x128xf32, #tpu.memory_space<vmem>>, vector<1x1x16x128xf32>
    %25 = vector.shape_cast %24 : vector<1x1x16x128xf32> to vector<16x128xf32>
    %26 = vector.shape_cast %23 : vector<16x128xf32> to vector<1x1x16x128xf32>
    tpu.vector_store %arg5[%c0_16, %c0_17, %c0_18, %c0_19], %26 {strides = array<i32>} : memref<1x1x16x128xf32, #tpu.memory_space<vmem>>, vector<1x1x16x128xf32>,
    return
  }
  func.func @transform_0(%arg0: i32, %arg1: i32) -> (i32, i32, i32, i32) {
    %c0_i32 = arith.constant 0 : i32
    %c0_i32_0 = arith.constant 0 : i32
    %c0_i32_1 = arith.constant 0 : i32
    return %arg0, %arg1, %c0_i32, %c0_i32_0 : i32, i32, i32, i32
  }
  func.func @transform_1(%arg0: i32, %arg1: i32) -> (i32, i32, i32) {
    %c0_i32 = arith.constant 0 : i32
    %c0_i32_0 = arith.constant 0 : i32
    %c0_i32_1 = arith.constant 0 : i32
    %c0_i32_2 = arith.constant 0 : i32
    return %c0_i32, %c0_i32_0, %c0_i32_1 : i32, i32, i32
  }
  func.func @transform_2(%arg0: i32, %arg1: i32) -> (i32, i32) {
    %c0_i32 = arith.constant 0 : i32
    %c0_i32_0 = arith.constant 0 : i32
    %c0_i32_1 = arith.constant 0 : i32
    return %c0_i32, %c0_i32_0 : i32, i32
  }
  func.func @transform_3(%arg0: i32, %arg1: i32) -> (i32, i32, i32, i32) {
    %c0_i32 = arith.constant 0 : i32
    %c0_i32_0 = arith.constant 0 : i32
    %c0_i32_1 = arith.constant 0 : i32
    return %arg0, %arg1, %c0_i32, %c0_i32_0 : i32, i32, i32, i32
  }
}

</mosaic_0001>

<bundles_post_ra>
// kernel: tpu_custom_call.1
= control target key start
LH: loop header
LB: loop body
LE: loop exit
PB: predicated region body
PF: predicated region fallthrough
CT: control target
= control target key end

     0   :  { %8 = vsyncpa [#allocation3], 0  ;;  %s1185_s0 = inlined_call_operand.vmem [shape: f32[2,1,18,72], index: 0, kind: input, shape index: {}]   ;;  %s1186_s1 = inlined_call_operand.hbm [shape: f32[3,72,128], index: 1, kind: input, shape index: {}]   ;;  %s1187_s2 = inlined_call_operand.vmem [shape: f32[1,128], index: 2, kind: input, shape index: {}]   ;;  %s1188_s3 = inlined_call_operand.hbm [shape: f32[2,1,16,128], index: 3, kind: output, shape index: {}]  }
   0x1   :  { %9 = vsyncpa [#allocation4], 0 }
   0x2   :  { %11 = vsyncpa [#allocation4 + $0x1], 0  ;;  %s1009_s12 = smov 0   ;;  %s1011_s13 = smov 0  }
   0x3   :  { %s1013_s14 = smov 0   ;;  %s1015_s15 = smov 0  }
   0x4   :  { %s1017_s16 = smov 0   ;;  %s1019_s17 = smov 0  }
   0x5 LB: > { %s628_s18 = sadd.s32 4294967295, %s981_s17   ;;  %s629_s19 = sadd.s32 4294967294, %s981_s17   ;;  %s981_s17 = sphi %s1019_s17, %s17_s17   ;;  %s977_s16 = sphi %s1017_s16, %s1206_s16   ;;  %s973_s15 = sphi %s1015_s15, %s1205_s15   ;;  %s969_s14 = sphi %s1013_s14, %s1204_s14   ;;  %s965_s13 = sphi %s1011_s13, %s1203_s13   ;;  %s961_s12 = sphi %s1009_s12, %s1202_s12  }
   0x6   : > { %s29_s20 = sadd.s32 1, %s977_s16  ;;  %s108_s21 = sadd.s32 1, %s969_s14 }
   0x7   : > { %p31_p0 = scmp.ge.s32.totalorder %s29_s20, 2  ;;  %p118_p1 = scmp.ne.s32.totalorder %s969_s14, %s965_s13 }
   0x8   : > { %p119_p2 = scmp.eq.s32.totalorder %s628_s18, 1  ;;  %p124_p3 = scmp.ne.s32.totalorder %s965_s13, %s961_s12 }
   0x9   : > { %s1208_s20 = smov (%p31_p0, %s29_s20), 0  ;;  %p125_p5 = scmp.eq.s32.totalorder %s629_s19, 1 }
   0xa   : > { %p1049_p4 = por %p119_p2, %p118_p1  ;;  %s103_s23 = ssub.s32 %s977_s16, %s1208_s20 }
   0xb   : > { %p630_p6 = scmp.ge.s32.totalorder %s981_s17, 1  ;;  %p106_p7 = scmp.eq.s32.totalorder %s103_s23, 0 }
   0xc   : > { %s1193_s22 = scalar_select %p1049_p4, 1, 0 }
   0xd   : > { %p1056_p8 = por %p125_p5, %p124_p3  ;;  %p132_p9 = scmp.lt.s32.totalorder %s981_s17, 3 }
   0xe   : > { %s1062_s25 = scalar_select %p106_p7, %s969_s14, %s108_s21  }
   0xf   : > { %s1194_s24 = scalar_select %p1056_p8, 1, 0 }
  0x10   : > { %p1064_p10 = pnand %p630_p6, %p132_p9  ;;  %p1068_p11 = scmp.eq.s32.totalorder %s628_s18, 0 }
  0x11   : > { %s983_s28 = smov [#allocation2]   ;;  %s871_s6 = scalar_lea.hbm %s1186_s1, 3456 }
  0x12   : > { %s1195_s26 = scalar_select %p1064_p10, 1, 0 }
  0x13   : > { %s1196_s27 = scalar_select %p1068_p11, 1, 0 }
  0x14   : > { %p807_p12 = pneg %p1064_p10  ;;  %s144_s29 = sshll.u32 %s983_s28, 4  ;;  %s145_s29 = int_to_ptr.vmem [resolvable:$true] %s144_s29 }
  0x15   : > { %p872_p0 = scmp.ne.s32.totalorder %s1186_s1, %s871_s6  ;;  %p878_p5 = scmp.lt.u32.totalorder %s871_s6, %s1186_s1 }
  0x16   : > { %p1076_p13 = pnand %p1068_p11, %p807_p12 }
  0x18   : > { %p873_p1 = pneg %p1076_p13 }
  0x1a   : > { %p874_p2 = pnand %p873_p1, %p872_p0 }
  0x1c   : > { %p875_p3 = pneg %p874_p2 }
  0x1e   : > { %p880_p6 = pnand %p878_p5, %p875_p3 }
  0x20   : > { %883 = shalt.err (!%p880_p6)
}
  0x21   : > { %s884_s11 = scalar_lea.vmem %s145_s29, 3456  ;;  %p892_p8 = scmp.lt.s32.totalorder %s145_s29, %s145_s29 }
  0x22   : > { %p885_p7 = scmp.ne.s32.totalorder %s145_s29, %s884_s11  ;;  %p893_p4 = scmp.lt.s32.totalorder %s884_s11, %s884_s11 }
  0x24   : > { %p887_p9 = pnand %p885_p7, %p873_p1  ;;  %p894_p11 = por %p893_p4, %p892_p8 }
  0x26   : > { %p888_p12 = pneg %p887_p9 }
  0x28   : > { %p895_p10 = pnand %p894_p11, %p888_p12 }
  0x2a   : > { %898 = shalt.err (!%p895_p10)
}
  0x2b   : > { %s984_s18 = smov 128   ;;  %s985_s19 = smov 8  }
  0x2c   : > { %810 = dma.hbm_to_vmem [thread:$0]  (!%p1076_p13), %s1186_s1, 3456, %s145_s29, [#allocation3], %s984_s18, %s984_s18, %s985_s19  }
  0x2d   : > { %p1198_p0 = scmp.ne.s32.totalorder %s1195_s26, 0 }
  0x2e   : > { %p1199_p2 = scmp.ne.s32.totalorder (!%p1198_p0), %s1196_s27, 0 }
  0x2f   : > { %175 = sbr.rel (%p1198_p0) target bundleno = 327 (0x147), region = 32 }
  0x36   : > { %952 = dma.done.wait (%p1199_p2), [#allocation3], 3456  }
  0x37   : > { %954 = vsyncadd (%p1199_p2), [#allocation3], 4294963840  ;;  %p203_p4 = scmp.lt.s32.totalorder %s973_s15, 1  ;;  %v316_v0 = vld [vmem:[#allocation2 + $0x48] sm:$0xff]  ;;  %v317_v1 = vld [vmem:[#allocation2 + $0x50] sm:$0xff]  ;;  %vm225_vm0 = vcmask 588800  }
  0x38   : > { %v318_v2 = vld [vmem:[#allocation2 + $0x58] sm:$0xff]  ;;  %v762_v3 = vpack.c.bf16 %v317_v1, %v316_v0  ;;  %v319_v4 = vld [vmem:[#allocation2 + $0x60] sm:$0xff]  ;;  %v320_v6 = vld [vmem:[#allocation2 + $0x68] sm:$0xff]  ;;  %vm326_vm1 = vcmask 1046528   ;;  %vm423_vm2 = vcmask 1045504   ;;  %s200_s26 = sand.u32 1, %s965_s13  }
  0x39   : > { %s204_s28 = scalar_select %p203_p4, %s973_s15, 1  ;;  %v766_v5 = vpack.c.bf16 %v319_v4, %v318_v2  ;;  %v321_v7 = vld [vmem:[#allocation2 + $0x70] sm:$0xff]  ;;  %v216_v8 = vld [vmem:[#allocation2] sm:$0xff]  ;;  %v217_v9 = vld [vmem:[#allocation2 + $0x8] sm:$0xff] }
  0x3a   : > { %763 = vmatprep.subr.bf16.mxu0 %v762_v3  ;;  %v746_v11 = vpack.c.bf16 %v217_v9, %v216_v8  ;;  %v770_v14 = vpack.c.bf16 %v321_v7, %v320_v6  ;;  %v218_v16 = vld [vmem:[#allocation2 + $0x10] sm:$0xff]  ;;  %v219_v17 = vld [vmem:[#allocation2 + $0x18] sm:$0xff]  ;;  %v323_v19 = vld [vmem:[#allocation2 + $0x80] sm:$0xff]  ;;  %s635_s7 = sshll.u32 %s200_s26, 4  ;;  %s649_s10 = sshll.u32 %s973_s15, 8 }
  0x3b   : > { %s800_s4 = smul.u32 24, %s204_s28  ;;  %765 = vmatpush3.bf16.msra.mxu0 %v762_v3  ;;  %v322_v18 = vld [vmem:[#allocation2 + $0x78] sm:$0xff]  ;;  %v750_v20 = vpack.c.bf16 %v219_v17, %v218_v16  ;;  %v220_v21 = vld [vmem:[#allocation2 + $0x20] sm:$0xff]  ;;  %v221_v23 = vld [vmem:[#allocation2 + $0x28] sm:$0xff]  ;;  %s202_s8 = scalar_lea.vmem [#allocation5], %s635_s7 }
  0x3c   : > { %767 = vmatprep.subr.bf16.mxu0 %v766_v5  ;;  %747 = vmatprep.subr.bf16.mxu1 %v746_v11  ;;  %v754_v24 = vpack.c.bf16 %v221_v23, %v220_v21  ;;  %v774_v25 = vpack.c.bf16 %v323_v19, %v322_v18  ;;  %v222_v26 = vld [vmem:[#allocation2 + $0x30] sm:$0xff]  ;;  %v223_v27 = vld [vmem:[#allocation2 + $0x38] sm:$0xff]  ;;  %v324_v30 = vld [vmem:[#allocation2 + $0x88] sm:$0xff]  ;;  %s534_s9 = sshll.u32 %s202_s8, 4  ;;  %s1137_s19 = scalar_lea.hbm %s1188_s3, %s649_s10  ;;  %s1132_s9 = int_to_ptr.vmem [resolvable:$true] %s534_s9 }
  0x3d   : > { %s1107_s29 = scalar_lea.vmem %s1185_s0, %s800_s4  ;;  %749 = vmatpush3.bf16.msra.mxu1 %v746_v11  ;;  %v758_v29 = vpack.c.bf16 %v223_v27, %v222_v26  ;;  %v414_v31 = vld [vmem:[#allocation2 + $0x90] sm:$0xff]  ;;  %v415_v32 = vld [vmem:[#allocation2 + $0x98] sm:$0xff]  ;;  %v416_v36 = vld [vmem:[#allocation2 + $0xa0] sm:$0xff]  ;;  %s1139_s15 = scalar_lea.sflag [#allocation4], %s200_s26 }
  0x3e   : > { %v212_v10 = vld [vmem:[%s1107_s29] sm:$0xff]  ;;  %v1111_v12 = vld [vmem:[%s1107_s29 + $0x8] sm:$0xff]  ;;  %751 = vmatprep.subr.bf16.mxu1 %v750_v20  ;;  %v214_v28 = vld [vmem:[%s1107_s29 + $0x10] sm:$0x3]  ;;  %v778_v38 = vpack.c.bf16 %v415_v32, %v414_v31  ;;  %s899_s21 = scalar_lea.vmem %s1132_s9, 256  ;;  %p1200_p10 = scmp.ne.s32.totalorder %s1193_s22, 0 }
  0x3f   : > { %v327_v13 = vrot.slane %v212_v10, 1  ;;  %701 = vmatprep.mubr.msk.f32.mxu1 %vm225_vm0, %v212_v10  ;;  %v328_v15 = vrot.slane %v1111_v12, 1  ;;  %769 = vmatpush3.bf16.msra.mxu0 %v766_v5  ;;  %v330_v33 = vrot.slane %v214_v28, 1  ;;  %v424_v34 = vrot.slane %v212_v10, 2  ;;  %v417_v37 = vld [vmem:[#allocation2 + $0xa8] sm:$0xff]  ;;  %v224_v39 = vld [vmem:[#allocation2 + $0x40] sm:$0xff]  ;;  %p900_p8 = scmp.ne.s32.totalorder %s1132_s9, %s899_s21 }
  0x40   : > { %771 = vmatprep.subr.bf16.mxu0 %v770_v14  ;;  %v425_v35 = vrot.slane %v1111_v12, 2  ;;  %v782_v41 = vpack.c.bf16 %v417_v37, %v416_v36  ;;  %v418_v43 = vld [vmem:[#allocation2 + $0xb0] sm:$0xff]  ;;  %v419_v44 = vld [vmem:[#allocation2 + $0xb8] sm:$0xff]  ;;  %v420_v46 = vld [vmem:[#allocation2 + $0xc0] sm:$0xff]  ;;  %v427_v49 = vrot.slane %v214_v28, 2  ;;  %s986_s23 = smov [#allocation5]  }
  0x41   : > { %v329_v22 = vsel %vm326_vm1, %v327_v13, %v328_v15  ;;  %753 = vmatpush3.bf16.msra.mxu1 %v750_v20  ;;  %v331_v40 = vsel %vm326_vm1, %v328_v15, %v330_v33  ;;  %v786_v45 = vpack.c.bf16 %v419_v44, %v418_v43  ;;  %v421_v47 = vld [vmem:[#allocation2 + $0xc8] sm:$0xff]  ;;  %v422_v50 = vld [vmem:[#allocation2 + $0xd0] sm:$0xff]  ;;  %p901_p11 = pnand %p900_p8, %p1200_p10  ;;  %s903_s28 = sshll.u32 %s986_s23, 4  ;;  %s904_s28 = int_to_ptr.vmem [resolvable:$false] %s903_s28 }
  0x42   : > { %722 = vmatprep.mubr.msk.f32.mxu0 %vm225_vm0, %v329_v22  ;;  %755 = vmatprep.subr.bf16.mxu1 %v754_v24  ;;  %v426_v42 = vsel %vm423_vm2, %v424_v34, %v425_v35  ;;  %v790_v48 = vpack.c.bf16 %v421_v47, %v420_v46  ;;  %v428_v51 = vsel %vm423_vm2, %v425_v35, %v427_v49  ;;  %v639_v54 = vld [vmem:[%s1187_s2] ss:$0 sm:$0xff]  ;;  %s905_s4 = scalar_lea.vmem %s904_s28, 512  ;;  %p906_p1 = scmp.lt.s32.totalorder %s1132_s9, %s904_s28 }
  0x43   : > { %773 = vmatpush3.bf16.msra.mxu0 %v770_v14  ;;  %p902_p13 = pneg %p901_p11  ;;  %p907_p3 = scmp.lt.s32.totalorder %s905_s4, %s899_s21 }
  0x44   : > { %775 = vmatprep.subr.bf16.mxu0 %v774_v25 }
  0x45   : > { %757 = vmatpush3.bf16.msra.mxu1 %v754_v24  ;;  %p908_p5 = por %p907_p3, %p906_p1 }
  0x46   : > { %759 = vmatprep.subr.bf16.mxu1 %v758_v29 }
  0x47   : > { %777 = vmatpush3.bf16.msra.mxu0 %v774_v25  ;;  %p909_p6 = pnand %p908_p5, %p902_p13 }
  0x48   : > { %720 = vmatprep.subr.mxu0 %v324_v30 }
  0x49   : > { %761 = vmatpush3.bf16.msra.mxu1 %v758_v29 }
  0x4a   : > { %699 = vmatprep.subr.mxu1 %v224_v39 }
  0x4b   : > { %721 = vmatpush3.msra.mxu0 %v324_v30 }
  0x4c   : > { %779 = vmatprep.subr.bf16.mxu0 %v778_v38  ;;  %723 = vmatmul.mubr.msk.f32.vlgmr.msra.gmra.mrb[0].mxu0 %vm225_vm0, %v331_v40 }
  0x4d   : > { %781 = vmatpush3.bf16.msra.mxu0 %v778_v38  ;;  %743 = vmatprep.mubr.msk.f32.mxu0 %vm225_vm0, %v426_v42 }
  0x4e   : > { %783 = vmatprep.subr.bf16.mxu0 %v782_v41  ;;  %700 = vmatpush3.msra.mxu1 %v224_v39 }
  0x4f   : > { %702 = vmatmul.mubr.msk.f32.vlgmr.msra.gmra.mrb[0].mxu1 %vm225_vm0, %v1111_v12 }
  0x51   : > { %785 = vmatpush3.bf16.msra.mxu0 %v782_v41 }
  0x52   : > { %787 = vmatprep.subr.bf16.mxu0 %v786_v45 }
  0x55   : > { %789 = vmatpush3.bf16.msra.mxu0 %v786_v45 }
  0x56   : > { %791 = vmatprep.subr.bf16.mxu0 %v790_v48 }
  0x59   : > { %793 = vmatpush3.bf16.msra.mxu0 %v790_v48 }
  0x5a   : > { %741 = vmatprep.subr.mxu0 %v422_v50 }
  0x5d   : > { %742 = vmatpush3.msra.mxu0 %v422_v50 }
  0x5e   : > { %744 = vmatmul.mubr.msk.f32.vlgmr.msra.gmra.mrb[0].mxu0 %vm225_vm0, %v428_v51 }
 0x122   : > { %v703_v52 = vpop.f32.mrb[0].mxu1 }
 0x123   : > { %v298_v53 = vpop.f32.mrb[1].mxu1  ;;  %v314_v55 = vadd.f32 %v703_v52, %v639_v54 }
 0x124   : > { %v313_v56 = vadd.f32 %v639_v54, %v298_v53 }
 0x131   : > { %v745_v57 = vpop.f32.mrb[0].mxu0 }
 0x132   : > { %v795_v58 = vadd.f32 %v745_v57, %v314_v55  ;;  %v499_v59 = vpop.f32.mrb[1].mxu0 }
 0x133   : > { %v797_v60 = vadd.f32 %v499_v59, %v313_v56 }
 0x134   : > { %vm511_vm3 = vcmp.ge.f32.partialorder %v795_v58, 0.0  ;;  %v513_v61 = vmul.f32 0.2, %v795_v58 }
 0x135   : > { %vm510_vm4 = vcmp.ge.f32.partialorder %v797_v60, 0.0  ;;  %v512_v62 = vmul.f32 0.2, %v797_v60 }
 0x136   : > { %v515_v63 = vsel %vm511_vm3, %v795_v58, %v513_v61 }
 0x137   : > { %517 = vst [vmem:[%s202_s8 + $0x8] sm:$0xff] %v515_v63  ;;  %v514_v0 = vsel %vm510_vm4, %v797_v60, %v512_v62 }
 0x138   : > { %516 = vst [vmem:[%s202_s8] sm:$0xff] %v514_v0 }
 0x139   : > { %912 = shalt.err (!%p909_p6)
}
 0x13a   : > { %s913_s30 = scalar_lea.hbm %s1137_s19, 256  ;;  %s917_s26 = scalar_lea.hbm %s1188_s3, 512 }
 0x13b   : > { %p914_p7 = scmp.ne.s32.totalorder %s1137_s19, %s913_s30  ;;  %p918_p0 = scmp.lt.u32.totalorder %s1137_s19, %s1188_s3 }
 0x13c   : > { %p919_p2 = scmp.lt.u32.totalorder %s917_s26, %s913_s30  ;;  %p921_p8 = scmp.lt.u32.totalorder %s913_s30, %s1137_s19 }
 0x13d   : > { %p915_p9 = pnand %p914_p7, %p1200_p10 }
 0x13e   : > { %p920_p4 = por %p919_p2, %p918_p0 }
 0x13f   : > { %p916_p12 = pneg %p915_p9 }
 0x140   : > { %p922_p11 = por %p921_p8, %p920_p4 }
 0x142   : > { %p923_p13 = pnand %p922_p11, %p916_p12 }
 0x144   : > { %926 = shalt.err (!%p923_p13)
}
 0x145   : > { %s987_s7 = smov 128   ;;  %s988_s8 = smov 8  }
 0x146   : > { %805 = dma.vmem_to_hbm [thread:$0]  (%p1200_p10), %s1132_s9, 256, %s1137_s19, %s1139_s15, %s987_s7, %s987_s7, %s988_s8  }
 0x147 PF: > { %p817_p1 = scmp.ge.s32.totalorder %s981_s17, 2  ;;  %s549_s10 = sand.u32 1, %s961_s12  }
 0x148   : > { %p1201_p3 = scmp.ne.s32.totalorder %s1194_s24, 0  ;;  %s550_s11 = scalar_lea.sflag [#allocation4], %s549_s10 }
 0x14a   : > { %p812_p5 = pnand %p817_p1, %p1201_p3 }
 0x14c   : > { %956 = dma.done.wait (!%p812_p5), %s550_s11, 256  }
 0x14d   : > { %958 = vsyncadd (!%p812_p5), %s550_s11, 4294967040  ;;  %s17_s17 = sadd.s32 1, %s981_s17   ;;  %s1202_s12 = smov %s965_s13 }
 0x14e   : > { %p14_p6 = scmp.ge.s32.totalorder %s17_s17, 4   ;;  %s1203_s13 = smov %s969_s14 }
 0x14f   : > { %s1204_s14 = smov %s1062_s25  ;;  %s1205_s15 = smov %s977_s16 }
 0x150   : > { %s1206_s16 = smov %s1208_s20  ;;  %16 = sbr.rel (!%p14_p6) target bundleno = 5 (0x5), region = 74 }
 0x157   :  { %555 = vsyncpa [#allocation3], 1 }
 0x158   :  { %557 = vsyncpa [#allocation3 + $0x1], 1 }
 0x159   :  { %558 = vsyncpa [#allocation4], 1 }
 0x15a   :  { %560 = vsyncpa [#allocation4 + $0x1], 1 }

// kernel: tpu_custom_call.1
= control target key start
LH: loop header
LB: loop body
LE: loop exit
PB: predicated region body
PF: predicated region fallthrough
CT: control target
= control target key end

     0   :  { %8 = vsyncpa [#allocation3], 0  ;;  %s1185_s0 = inlined_call_operand.vmem [shape: f32[2,1,18,72], index: 0, kind: input, shape index: {}]   ;;  %s1186_s1 = inlined_call_operand.hbm [shape: f32[3,72,128], index: 1, kind: input, shape index: {}]   ;;  %s1187_s2 = inlined_call_operand.vmem [shape: f32[1,128], index: 2, kind: input, shape index: {}]   ;;  %s1188_s3 = inlined_call_operand.hbm [shape: f32[2,1,16,128], index: 3, kind: output, shape index: {}]  }
   0x1   :  { %9 = vsyncpa [#allocation4], 0 }
   0x2   :  { %11 = vsyncpa [#allocation4 + $0x1], 0  ;;  %s1009_s12 = smov 0   ;;  %s1011_s13 = smov 0  }
   0x3   :  { %s1013_s14 = smov 0   ;;  %s1015_s15 = smov 0  }
   0x4   :  { %s1017_s16 = smov 0   ;;  %s1019_s17 = smov 0  }
   0x5 LB: > { %s628_s18 = sadd.s32 4294967295, %s981_s17   ;;  %s629_s19 = sadd.s32 4294967294, %s981_s17   ;;  %s981_s17 = sphi %s1019_s17, %s17_s17   ;;  %s977_s16 = sphi %s1017_s16, %s1206_s16   ;;  %s973_s15 = sphi %s1015_s15, %s1205_s15   ;;  %s969_s14 = sphi %s1013_s14, %s1204_s14   ;;  %s965_s13 = sphi %s1011_s13, %s1203_s13   ;;  %s961_s12 = sphi %s1009_s12, %s1202_s12  }
   0x6   : > { %s29_s20 = sadd.s32 1, %s977_s16  ;;  %s108_s21 = sadd.s32 1, %s969_s14 }
   0x7   : > { %p31_p0 = scmp.ge.s32.totalorder %s29_s20, 2  ;;  %p118_p1 = scmp.ne.s32.totalorder %s969_s14, %s965_s13 }
   0x8   : > { %p119_p2 = scmp.eq.s32.totalorder %s628_s18, 1  ;;  %p124_p3 = scmp.ne.s32.totalorder %s965_s13, %s961_s12 }
   0x9   : > { %s1208_s20 = smov (%p31_p0, %s29_s20), 0  ;;  %p125_p5 = scmp.eq.s32.totalorder %s629_s19, 1 }
   0xa   : > { %p1049_p4 = por %p119_p2, %p118_p1  ;;  %s103_s23 = ssub.s32 %s977_s16, %s1208_s20 }
   0xb   : > { %p630_p6 = scmp.ge.s32.totalorder %s981_s17, 1  ;;  %p106_p7 = scmp.eq.s32.totalorder %s103_s23, 0 }
   0xc   : > { %s1193_s22 = scalar_select %p1049_p4, 1, 0 }
   0xd   : > { %p1056_p8 = por %p125_p5, %p124_p3  ;;  %p132_p9 = scmp.lt.s32.totalorder %s981_s17, 3 }
   0xe   : > { %s1062_s25 = scalar_select %p106_p7, %s969_s14, %s108_s21  }
   0xf   : > { %s1194_s24 = scalar_select %p1056_p8, 1, 0 }
  0x10   : > { %p1064_p10 = pnand %p630_p6, %p132_p9  ;;  %p1068_p11 = scmp.eq.s32.totalorder %s628_s18, 0 }
  0x11   : > { %s983_s28 = smov [#allocation2]   ;;  %s871_s6 = scalar_lea.hbm %s1186_s1, 3456 }
  0x12   : > { %s1195_s26 = scalar_select %p1064_p10, 1, 0 }
  0x13   : > { %s1196_s27 = scalar_select %p1068_p11, 1, 0 }
  0x14   : > { %p807_p12 = pneg %p1064_p10  ;;  %s144_s29 = sshll.u32 %s983_s28, 4  ;;  %s145_s29 = int_to_ptr.vmem [resolvable:$true] %s144_s29 }
  0x15   : > { %p872_p0 = scmp.ne.s32.totalorder %s1186_s1, %s871_s6  ;;  %p878_p5 = scmp.lt.u32.totalorder %s871_s6, %s1186_s1 }
  0x16   : > { %p1076_p13 = pnand %p1068_p11, %p807_p12 }
  0x18   : > { %p873_p1 = pneg %p1076_p13 }
  0x1a   : > { %p874_p2 = pnand %p873_p1, %p872_p0 }
  0x1c   : > { %p875_p3 = pneg %p874_p2 }
  0x1e   : > { %p880_p6 = pnand %p878_p5, %p875_p3 }
  0x20   : > { %883 = shalt.err (!%p880_p6)
}
  0x21   : > { %s884_s11 = scalar_lea.vmem %s145_s29, 3456  ;;  %p892_p8 = scmp.lt.s32.totalorder %s145_s29, %s145_s29 }
  0x22   : > { %p885_p7 = scmp.ne.s32.totalorder %s145_s29, %s884_s11  ;;  %p893_p4 = scmp.lt.s32.totalorder %s884_s11, %s884_s11 }
  0x24   : > { %p887_p9 = pnand %p885_p7, %p873_p1  ;;  %p894_p11 = por %p893_p4, %p892_p8 }
  0x26   : > { %p888_p12 = pneg %p887_p9 }
  0x28   : > { %p895_p10 = pnand %p894_p11, %p888_p12 }
  0x2a   : > { %898 = shalt.err (!%p895_p10)
}
  0x2b   : > { %s984_s18 = smov 128   ;;  %s985_s19 = smov 8  }
  0x2c   : > { %810 = dma.hbm_to_vmem [thread:$0]  (!%p1076_p13), %s1186_s1, 3456, %s145_s29, [#allocation3], %s984_s18, %s984_s18, %s985_s19  }
  0x2d   : > { %p1198_p0 = scmp.ne.s32.totalorder %s1195_s26, 0 }
  0x2e   : > { %p1199_p2 = scmp.ne.s32.totalorder (!%p1198_p0), %s1196_s27, 0 }
  0x2f   : > { %175 = sbr.rel (%p1198_p0) target bundleno = 327 (0x147), region = 32 }
  0x36   : > { %952 = dma.done.wait (%p1199_p2), [#allocation3], 3456  }
  0x37   : > { %954 = vsyncadd (%p1199_p2), [#allocation3], 4294963840  ;;  %p203_p4 = scmp.lt.s32.totalorder %s973_s15, 1  ;;  %v316_v0 = vld [vmem:[#allocation2 + $0x48] sm:$0xff]  ;;  %v317_v1 = vld [vmem:[#allocation2 + $0x50] sm:$0xff]  ;;  %vm225_vm0 = vcmask 588800  }
  0x38   : > { %v318_v2 = vld [vmem:[#allocation2 + $0x58] sm:$0xff]  ;;  %v762_v3 = vpack.c.bf16 %v317_v1, %v316_v0  ;;  %v319_v4 = vld [vmem:[#allocation2 + $0x60] sm:$0xff]  ;;  %v320_v6 = vld [vmem:[#allocation2 + $0x68] sm:$0xff]  ;;  %vm326_vm1 = vcmask 1046528   ;;  %vm423_vm2 = vcmask 1045504   ;;  %s200_s26 = sand.u32 1, %s965_s13  }
  0x39   : > { %s204_s28 = scalar_select %p203_p4, %s973_s15, 1  ;;  %v766_v5 = vpack.c.bf16 %v319_v4, %v318_v2  ;;  %v321_v7 = vld [vmem:[#allocation2 + $0x70] sm:$0xff]  ;;  %v216_v8 = vld [vmem:[#allocation2] sm:$0xff]  ;;  %v217_v9 = vld [vmem:[#allocation2 + $0x8] sm:$0xff] }
  0x3a   : > { %763 = vmatprep.subr.bf16.mxu0 %v762_v3  ;;  %v746_v11 = vpack.c.bf16 %v217_v9, %v216_v8  ;;  %v770_v14 = vpack.c.bf16 %v321_v7, %v320_v6  ;;  %v218_v16 = vld [vmem:[#allocation2 + $0x10] sm:$0xff]  ;;  %v219_v17 = vld [vmem:[#allocation2 + $0x18] sm:$0xff]  ;;  %v323_v19 = vld [vmem:[#allocation2 + $0x80] sm:$0xff]  ;;  %s635_s7 = sshll.u32 %s200_s26, 4  ;;  %s649_s10 = sshll.u32 %s973_s15, 8 }
  0x3b   : > { %s800_s4 = smul.u32 24, %s204_s28  ;;  %765 = vmatpush3.bf16.msra.mxu0 %v762_v3  ;;  %v322_v18 = vld [vmem:[#allocation2 + $0x78] sm:$0xff]  ;;  %v750_v20 = vpack.c.bf16 %v219_v17, %v218_v16  ;;  %v220_v21 = vld [vmem:[#allocation2 + $0x20] sm:$0xff]  ;;  %v221_v23 = vld [vmem:[#allocation2 + $0x28] sm:$0xff]  ;;  %s202_s8 = scalar_lea.vmem [#allocation5], %s635_s7 }
  0x3c   : > { %767 = vmatprep.subr.bf16.mxu0 %v766_v5  ;;  %747 = vmatprep.subr.bf16.mxu1 %v746_v11  ;;  %v754_v24 = vpack.c.bf16 %v221_v23, %v220_v21  ;;  %v774_v25 = vpack.c.bf16 %v323_v19, %v322_v18  ;;  %v222_v26 = vld [vmem:[#allocation2 + $0x30] sm:$0xff]  ;;  %v223_v27 = vld [vmem:[#allocation2 + $0x38] sm:$0xff]  ;;  %v324_v30 = vld [vmem:[#allocation2 + $0x88] sm:$0xff]  ;;  %s534_s9 = sshll.u32 %s202_s8, 4  ;;  %s1137_s19 = scalar_lea.hbm %s1188_s3, %s649_s10  ;;  %s1132_s9 = int_to_ptr.vmem [resolvable:$true] %s534_s9 }
  0x3d   : > { %s1107_s29 = scalar_lea.vmem %s1185_s0, %s800_s4  ;;  %749 = vmatpush3.bf16.msra.mxu1 %v746_v11  ;;  %v758_v29 = vpack.c.bf16 %v223_v27, %v222_v26  ;;  %v414_v31 = vld [vmem:[#allocation2 + $0x90] sm:$0xff]  ;;  %v415_v32 = vld [vmem:[#allocation2 + $0x98] sm:$0xff]  ;;  %v416_v36 = vld [vmem:[#allocation2 + $0xa0] sm:$0xff]  ;;  %s1139_s15 = scalar_lea.sflag [#allocation4], %s200_s26 }
  0x3e   : > { %v212_v10 = vld [vmem:[%s1107_s29] sm:$0xff]  ;;  %v1111_v12 = vld [vmem:[%s1107_s29 + $0x8] sm:$0xff]  ;;  %751 = vmatprep.subr.bf16.mxu1 %v750_v20  ;;  %v214_v28 = vld [vmem:[%s1107_s29 + $0x10] sm:$0x3]  ;;  %v778_v38 = vpack.c.bf16 %v415_v32, %v414_v31  ;;  %s899_s21 = scalar_lea.vmem %s1132_s9, 256  ;;  %p1200_p10 = scmp.ne.s32.totalorder %s1193_s22, 0 }
  0x3f   : > { %v327_v13 = vrot.slane %v212_v10, 1  ;;  %701 = vmatprep.mubr.msk.f32.mxu1 %vm225_vm0, %v212_v10  ;;  %v328_v15 = vrot.slane %v1111_v12, 1  ;;  %769 = vmatpush3.bf16.msra.mxu0 %v766_v5  ;;  %v330_v33 = vrot.slane %v214_v28, 1  ;;  %v424_v34 = vrot.slane %v212_v10, 2  ;;  %v417_v37 = vld [vmem:[#allocation2 + $0xa8] sm:$0xff]  ;;  %v224_v39 = vld [vmem:[#allocation2 + $0x40] sm:$0xff]  ;;  %p900_p8 = scmp.ne.s32.totalorder %s1132_s9, %s899_s21 }
  0x40   : > { %771 = vmatprep.subr.bf16.mxu0 %v770_v14  ;;  %v425_v35 = vrot.slane %v1111_v12, 2  ;;  %v782_v41 = vpack.c.bf16 %v417_v37, %v416_v36  ;;  %v418_v43 = vld [vmem:[#allocation2 + $0xb0] sm:$0xff]  ;;  %v419_v44 = vld [vmem:[#allocation2 + $0xb8] sm:$0xff]  ;;  %v420_v46 = vld [vmem:[#allocation2 + $0xc0] sm:$0xff]  ;;  %v427_v49 = vrot.slane %v214_v28, 2  ;;  %s986_s23 = smov [#allocation5]  }
  0x41   : > { %v329_v22 = vsel %vm326_vm1, %v327_v13, %v328_v15  ;;  %753 = vmatpush3.bf16.msra.mxu1 %v750_v20  ;;  %v331_v40 = vsel %vm326_vm1, %v328_v15, %v330_v33  ;;  %v786_v45 = vpack.c.bf16 %v419_v44, %v418_v43  ;;  %v421_v47 = vld [vmem:[#allocation2 + $0xc8] sm:$0xff]  ;;  %v422_v50 = vld [vmem:[#allocation2 + $0xd0] sm:$0xff]  ;;  %p901_p11 = pnand %p900_p8, %p1200_p10  ;;  %s903_s28 = sshll.u32 %s986_s23, 4  ;;  %s904_s28 = int_to_ptr.vmem [resolvable:$false] %s903_s28 }
  0x42   : > { %722 = vmatprep.mubr.msk.f32.mxu0 %vm225_vm0, %v329_v22  ;;  %755 = vmatprep.subr.bf16.mxu1 %v754_v24  ;;  %v426_v42 = vsel %vm423_vm2, %v424_v34, %v425_v35  ;;  %v790_v48 = vpack.c.bf16 %v421_v47, %v420_v46  ;;  %v428_v51 = vsel %vm423_vm2, %v425_v35, %v427_v49  ;;  %v639_v54 = vld [vmem:[%s1187_s2] ss:$0 sm:$0xff]  ;;  %s905_s4 = scalar_lea.vmem %s904_s28, 512  ;;  %p906_p1 = scmp.lt.s32.totalorder %s1132_s9, %s904_s28 }
  0x43   : > { %773 = vmatpush3.bf16.msra.mxu0 %v770_v14  ;;  %p902_p13 = pneg %p901_p11  ;;  %p907_p3 = scmp.lt.s32.totalorder %s905_s4, %s899_s21 }
  0x44   : > { %775 = vmatprep.subr.bf16.mxu0 %v774_v25 }
  0x45   : > { %757 = vmatpush3.bf16.msra.mxu1 %v754_v24  ;;  %p908_p5 = por %p907_p3, %p906_p1 }
  0x46   : > { %759 = vmatprep.subr.bf16.mxu1 %v758_v29 }
  0x47   : > { %777 = vmatpush3.bf16.msra.mxu0 %v774_v25  ;;  %p909_p6 = pnand %p908_p5, %p902_p13 }
  0x48   : > { %720 = vmatprep.subr.mxu0 %v324_v30 }
  0x49   : > { %761 = vmatpush3.bf16.msra.mxu1 %v758_v29 }
  0x4a   : > { %699 = vmatprep.subr.mxu1 %v224_v39 }
  0x4b   : > { %721 = vmatpush3.msra.mxu0 %v324_v30 }
  0x4c   : > { %779 = vmatprep.subr.bf16.mxu0 %v778_v38  ;;  %723 = vmatmul.mubr.msk.f32.vlgmr.msra.gmra.mrb[0].mxu0 %vm225_vm0, %v331_v40 }
  0x4d   : > { %781 = vmatpush3.bf16.msra.mxu0 %v778_v38  ;;  %743 = vmatprep.mubr.msk.f32.mxu0 %vm225_vm0, %v426_v42 }
  0x4e   : > { %783 = vmatprep.subr.bf16.mxu0 %v782_v41  ;;  %700 = vmatpush3.msra.mxu1 %v224_v39 }
  0x4f   : > { %702 = vmatmul.mubr.msk.f32.vlgmr.msra.gmra.mrb[0].mxu1 %vm225_vm0, %v1111_v12 }
  0x51   : > { %785 = vmatpush3.bf16.msra.mxu0 %v782_v41 }
  0x52   : > { %787 = vmatprep.subr.bf16.mxu0 %v786_v45 }
  0x55   : > { %789 = vmatpush3.bf16.msra.mxu0 %v786_v45 }
  0x56   : > { %791 = vmatprep.subr.bf16.mxu0 %v790_v48 }
  0x59   : > { %793 = vmatpush3.bf16.msra.mxu0 %v790_v48 }
  0x5a   : > { %741 = vmatprep.subr.mxu0 %v422_v50 }
  0x5d   : > { %742 = vmatpush3.msra.mxu0 %v422_v50 }
  0x5e   : > { %744 = vmatmul.mubr.msk.f32.vlgmr.msra.gmra.mrb[0].mxu0 %vm225_vm0, %v428_v51 }
 0x122   : > { %v703_v52 = vpop.f32.mrb[0].mxu1 }
 0x123   : > { %v298_v53 = vpop.f32.mrb[1].mxu1  ;;  %v314_v55 = vadd.f32 %v703_v52, %v639_v54 }
 0x124   : > { %v313_v56 = vadd.f32 %v639_v54, %v298_v53 }
 0x131   : > { %v745_v57 = vpop.f32.mrb[0].mxu0 }
 0x132   : > { %v795_v58 = vadd.f32 %v745_v57, %v314_v55  ;;  %v499_v59 = vpop.f32.mrb[1].mxu0 }
 0x133   : > { %v797_v60 = vadd.f32 %v499_v59, %v313_v56 }
 0x134   : > { %vm511_vm3 = vcmp.ge.f32.partialorder %v795_v58, 0.0  ;;  %v513_v61 = vmul.f32 0.2, %v795_v58 }
 0x135   : > { %vm510_vm4 = vcmp.ge.f32.partialorder %v797_v60, 0.0  ;;  %v512_v62 = vmul.f32 0.2, %v797_v60 }
 0x136   : > { %v515_v63 = vsel %vm511_vm3, %v795_v58, %v513_v61 }
 0x137   : > { %517 = vst [vmem:[%s202_s8 + $0x8] sm:$0xff] %v515_v63  ;;  %v514_v0 = vsel %vm510_vm4, %v797_v60, %v512_v62 }
 0x138   : > { %516 = vst [vmem:[%s202_s8] sm:$0xff] %v514_v0 }
 0x139   : > { %912 = shalt.err (!%p909_p6)
}
 0x13a   : > { %s913_s30 = scalar_lea.hbm %s1137_s19, 256  ;;  %s917_s26 = scalar_lea.hbm %s1188_s3, 512 }
 0x13b   : > { %p914_p7 = scmp.ne.s32.totalorder %s1137_s19, %s913_s30  ;;  %p918_p0 = scmp.lt.u32.totalorder %s1137_s19, %s1188_s3 }
 0x13c   : > { %p919_p2 = scmp.lt.u32.totalorder %s917_s26, %s913_s30  ;;  %p921_p8 = scmp.lt.u32.totalorder %s913_s30, %s1137_s19 }
 0x13d   : > { %p915_p9 = pnand %p914_p7, %p1200_p10 }
 0x13e   : > { %p920_p4 = por %p919_p2, %p918_p0 }
 0x13f   : > { %p916_p12 = pneg %p915_p9 }
 0x140   : > { %p922_p11 = por %p921_p8, %p920_p4 }
 0x142   : > { %p923_p13 = pnand %p922_p11, %p916_p12 }
 0x144   : > { %926 = shalt.err (!%p923_p13)
}
 0x145   : > { %s987_s7 = smov 128   ;;  %s988_s8 = smov 8  }
 0x146   : > { %805 = dma.vmem_to_hbm [thread:$0]  (%p1200_p10), %s1132_s9, 256, %s1137_s19, %s1139_s15, %s987_s7, %s987_s7, %s988_s8  }
 0x147 PF: > { %p817_p1 = scmp.ge.s32.totalorder %s981_s17, 2  ;;  %s549_s10 = sand.u32 1, %s961_s12  }
 0x148   : > { %p1201_p3 = scmp.ne.s32.totalorder %s1194_s24, 0  ;;  %s550_s11 = scalar_lea.sflag [#allocation4], %s549_s10 }
 0x14a   : > { %p812_p5 = pnand %p817_p1, %p1201_p3 }
 0x14c   : > { %956 = dma.done.wait (!%p812_p5), %s550_s11, 256  }
 0x14d   : > { %958 = vsyncadd (!%p812_p5), %s550_s11, 4294967040  ;;  %s17_s17 = sadd.s32 1, %s981_s17   ;;  %s1202_s12 = smov %s965_s13 }
 0x14e   : > { %p14_p6 = scmp.ge.s32.totalorder %s17_s17, 4   ;;  %s1203_s13 = smov %s969_s14 }
 0x14f   : > { %s1204_s14 = smov %s1062_s25  ;;  %s1205_s15 = smov %s977_s16 }
 0x150   : > { %s1206_s16 = smov %s1208_s20  ;;  %16 = sbr.rel (!%p14_p6) target bundleno = 5 (0x5), region = 74 }
 0x157   :  { %555 = vsyncpa [#allocation3], 1 }
 0x158   :  { %557 = vsyncpa [#allocation3 + $0x1], 1 }
 0x159   :  { %558 = vsyncpa [#allocation4], 1 }
 0x15a   :  { %560 = vsyncpa [#allocation4 + $0x1], 1 }

</bundles_post_ra>
